<compile_context>
chip_gen: v6e
topology: v6e:2x2x1
jax: 0.10.0
libtpu: 0.0.40
codegen_flags: <defaults>
</compile_context>

<pallas_src>
import jax
import jax.numpy as jnp
from jax.experimental import pallas as pl
from jax.experimental.pallas import tpu as pltpu


def _round_up(x, m):
    return (x + m - 1) // m * m


def _gcn_kernel(adj_ref, ann_ref, w12_ref, b12_ref, out_ref):
    """One grid step: a block of `bt` batch elements.

    adj_ref : (bt, N, N)   edge-type-summed adjacency (compute dtype)
    ann_ref : (bt, N, F)   annotations (compute dtype)
    w12_ref : (F, 2*Up)    [W1^T | 0 | W2^T | 0] (compute dtype)
    b12_ref : (1, 2*Up)    [b1 | 0 | b2 | 0]  (f32)
    out_ref : (bt, N, Up)  f32 (padded lanes sliced off by the wrapper)
    """
    bt, n, f = ann_ref.shape
    up = out_ref.shape[-1]

    # Fused linear1 + linear2 over the flattened (bt*N, F) annotation block.
    ann2 = ann_ref[...].reshape(bt * n, f)
    h12 = jnp.dot(ann2, w12_ref[...], preferred_element_type=jnp.float32)
    h12 = h12 + b12_ref[...]                              # f32, (bt*N, 2*Up)

    h1 = h12[:, :up].reshape(bt, n, up)                   # linear1(ann) + b1
    h2 = h12[:, up:].reshape(bt, n, up)                   # linear2(ann) + b2

    # sum_e(adj[e] @ h1) == (sum_e adj[e]) @ h1 ; adj pre-summed in wrapper.
    msg = jnp.einsum('bnm,bmu->bnu', adj_ref[...], h1.astype(adj_ref.dtype),
                     preferred_element_type=jnp.float32)

    # activation = tanh; dropout_rate = 0.0 -> identity.
    out_ref[...] = jnp.tanh(msg + h2).astype(out_ref.dtype)


def _choose_block_b(B, N, F, U_pad):
    """Batch elements per grid step."""
    # Enough rows (bt*N) to feed the MXU ...
    bt = max(1, min(B, (256 + N - 1) // N))
    # ... but keep the grid length >= 2 when possible (v7x: 2 TensorCores).
    if B >= 2:
        bt = min(bt, max(1, B // 2))

    # VMEM guard: double-buffered per-step inputs (bf16) + output (f32)
    # comfortably under the v7x default scoped limit.
    def step_bytes(b):
        return 2 * b * N * (N * 2 + F * 2 + U_pad * 4)

    while bt > 1 and step_bytes(bt) > 8 * 1024 * 1024:
        bt //= 2
    return bt


def graph_convolution(adjacency_tensor, hidden_tensor, node_tensor,
                      w1, b1, w2, b2, *, compute_dtype=jnp.bfloat16):
    """Pallas forward of GraphConvolution (activation=tanh, dropout_rate=0).

    w1, w2: nn.Linear weights, PyTorch shape (units, in_features); b: (units,).
    """
    # ---- glue (plain JAX) ---------------------------------------------------
    # Pre-sum adjacency over edge types; also removes the HBM-level permute.
    adj_sum = jnp.sum(adjacency_tensor[..., 1:].astype(jnp.float32), axis=-1)
    if hidden_tensor is not None:
        annotations = jnp.concatenate((hidden_tensor, node_tensor), axis=-1)
    else:
        annotations = node_tensor
    annotations = annotations.astype(jnp.float32)

    B, N, _ = adj_sum.shape
    F = annotations.shape[-1]
    U = w1.shape[0]
    U_pad = _round_up(U, 128)          # lane-dense output / weight columns

    # Fused, zero-padded weights: [W1^T | 0 | W2^T | 0] -> (F, 2*U_pad).
    w12 = jnp.zeros((F, 2 * U_pad), jnp.float32)
    w12 = w12.at[:, :U].set(jnp.asarray(w1, jnp.float32).T)
    w12 = w12.at[:, U_pad:U_pad + U].set(jnp.asarray(w2, jnp.float32).T)
    b12 = jnp.zeros((1, 2 * U_pad), jnp.float32)
    b12 = b12.at[0, :U].set(jnp.asarray(b1, jnp.float32))
    b12 = b12.at[0, U_pad:U_pad + U].set(jnp.asarray(b2, jnp.float32))

    # bf16 MXU inputs, f32 accumulation / epilogue (biases stay f32).
    adj_sum = adj_sum.astype(compute_dtype)
    annotations = annotations.astype(compute_dtype)
    w12 = w12.astype(compute_dtype)

    bt = _choose_block_b(B, N, F, U_pad)
    B_pad = _round_up(B, bt)
    if B_pad != B:
        pad = ((0, B_pad - B), (0, 0), (0, 0))
        adj_sum = jnp.pad(adj_sum, pad)
        annotations = jnp.pad(annotations, pad)

    out = pl.pallas_call(
        _gcn_kernel,
        out_shape=jax.ShapeDtypeStruct((B_pad, N, U_pad), jnp.float32),
        grid_spec=pltpu.PrefetchScalarGridSpec(
            num_scalar_prefetch=0,
            grid=(B_pad // bt,),
            in_specs=[
                pl.BlockSpec((bt, N, N), lambda b: (b, 0, 0)),     # adj_sum
                pl.BlockSpec((bt, N, F), lambda b: (b, 0, 0)),     # annotations
                pl.BlockSpec((F, 2 * U_pad), lambda b: (0, 0)),    # fused W
                pl.BlockSpec((1, 2 * U_pad), lambda b: (0, 0)),    # fused b
            ],
            out_specs=pl.BlockSpec((bt, N, U_pad), lambda b: (b, 0, 0)),
        ),
        compiler_params=pltpu.CompilerParams(
            dimension_semantics=("parallel",)),
    )(adj_sum, annotations, w12, b12)

    return out[:B, :, :U]


def _reference(adjacency_tensor, hidden_tensor, node_tensor, w1, b1, w2, b2):
    """Direct transcription of the PyTorch forward (f32)."""
    adj = jnp.transpose(adjacency_tensor[:, :, :, 1:], (0, 3, 1, 2))
    ann = (jnp.concatenate((hidden_tensor, node_tensor), axis=-1)
           if hidden_tensor is not None else node_tensor)
    h1 = ann @ w1.T + b1
    stacked = jnp.broadcast_to(h1[:, None],
                               (adj.shape[0], adj.shape[1]) + h1.shape[1:])
    out = jnp.einsum('benm,bemu->benu', adj, stacked)
    out = jnp.sum(out, axis=1) + (ann @ w2.T + b2)
    return jnp.tanh(out)


if __name__ == "__main__":
    key = jax.random.PRNGKey(0)
    k_adj, k_hid, k_node, k_w1, k_b1, k_w2, k_b2 = jax.random.split(key, 7)

    # small shapes: batch=2, nodes=16, edge-types(+1)=5, hidden=24, node_feat=8
    B, N, E_total = 2, 16, 5
    Dh, Dn = 24, 8
    in_features = Dh + Dn                              # 32
    units = 32

    adjacency_tensor = jax.random.uniform(k_adj, (B, N, N, E_total),
                                          dtype=jnp.float32)
    hidden_tensor = jax.random.normal(k_hid, (B, N, Dh), dtype=jnp.float32)
    node_tensor = jax.random.normal(k_node, (B, N, Dn), dtype=jnp.float32)

    bound = 1.0 / (in_features ** 0.5)
    w1 = jax.random.uniform(k_w1, (units, in_features), jnp.float32,
                            minval=-bound, maxval=bound)
    b1 = jax.random.uniform(k_b1, (units,), jnp.float32,
                            minval=-bound, maxval=bound)
    w2 = jax.random.uniform(k_w2, (units, in_features), jnp.float32,
                            minval=-bound, maxval=bound)
    b2 = jax.random.uniform(k_b2, (units,), jnp.float32,
                            minval=-bound, maxval=bound)

    ref = _reference(adjacency_tensor, hidden_tensor, node_tensor,
                     w1, b1, w2, b2)

    # f32 compute path: tight structural correctness check.
    out_f32 = graph_convolution(adjacency_tensor, hidden_tensor, node_tensor,
                                w1, b1, w2, b2, compute_dtype=jnp.float32)
    out_f32 = jax.block_until_ready(out_f32)
    assert out_f32.shape == (B, N, units)
    assert jnp.allclose(out_f32, ref, atol=1e-4, rtol=1e-4)

    # Default bf16-MXU path (f32 accumulation): looser tolerance.
    out_bf16 = graph_convolution(adjacency_tensor, hidden_tensor, node_tensor,
                                 w1, b1, w2, b2)
    out_bf16 = jax.block_until_ready(out_bf16)
    assert out_bf16.shape == (B, N, units)
    assert jnp.allclose(out_bf16, ref, atol=1e-1, rtol=1e-2)

    print("KERNEL_OK")
</pallas_src>

<mosaic_0001>
module attributes {stable_mosaic.version = 11 : i64} {
  func.func @_gcn_kernel(%arg0: i32, %arg1: memref<1x16x16xf32, #tpu.memory_space<vmem>>, %arg2: memref<1x16x32xf32, #tpu.memory_space<vmem>>, %arg3: memref<32x256xf32, #tpu.memory_space<vmem>>, %arg4: memref<1x256xf32, #tpu.memory_space<vmem>>, %arg5: memref<1x16x128xf32, #tpu.memory_space<vmem>>) attributes {dimension_semantics = [#tpu.dimension_semantics<parallel>], iteration_bounds = array<i64: 2>, scalar_prefetch = 0 : i64, scratch_operands = 0 : i64, tpu.core_type = #tpu.core_type<tc>, window_params = [{transform_indices = @transform_0, window_bounds = array<i64: 1, 16, 16>}, {transform_indices = @transform_1, window_bounds = array<i64: 1, 16, 32>}, {pipeline_mode = #tpu.pipeline_mode<synchronous>, transform_indices = @transform_2, window_bounds = array<i64: 32, 256>}, {pipeline_mode = #tpu.pipeline_mode<synchronous>, transform_indices = @transform_3, window_bounds = array<i64: 1, 256>}, {transform_indices = @transform_4, window_bounds = array<i64: 1, 16, 128>}]} {
    %c0 = arith.constant 0 : index
    %c0_0 = arith.constant 0 : index
    %c0_1 = arith.constant 0 : index
    %0 = vector.load %arg2[%c0, %c0_0, %c0_1] : memref<1x16x32xf32, #tpu.memory_space<vmem>>, vector<1x16x32xf32>
    %1 = vector.shape_cast %0 : vector<1x16x32xf32> to vector<16x32xf32>
    %c0_2 = arith.constant 0 : index
    %c0_3 = arith.constant 0 : index
    %2 = vector.load %arg3[%c0_2, %c0_3] : memref<32x256xf32, #tpu.memory_space<vmem>>, vector<32x256xf32>
    %cst = arith.constant dense<0.000000e+00> : vector<16x256xf32>
    %3 = tpu.matmul %1, %2, %cst {dimension_numbers = #tpu.dot_dimension_numbers<[1], [0], [0], [1], [0, 0, 1, 1], [], []>} : vector<16x32xf32>, vector<32x256xf32>, vector<16x256xf32> -> vector<16x256xf32>
    %c0_4 = arith.constant 0 : index
    %c0_5 = arith.constant 0 : index
    %4 = vector.load %arg4[%c0_4, %c0_5] : memref<1x256xf32, #tpu.memory_space<vmem>>, vector<1x256xf32>
    %5 = vector.broadcast %4 : vector<1x256xf32> to vector<16x256xf32>
    %6 = arith.addf %3, %5 : vector<16x256xf32>
    %7 = vector.extract_strided_slice %6 {offsets = [0, 0], sizes = [16, 128], strides = [1, 1]} : vector<16x256xf32> to vector<16x128xf32>
    %8 = vector.shape_cast %7 : vector<16x128xf32> to vector<1x16x128xf32>
    %9 = vector.extract_strided_slice %6 {offsets = [0, 128], sizes = [16, 128], strides = [1, 1]} : vector<16x256xf32> to vector<16x128xf32>
    %10 = vector.shape_cast %9 : vector<16x128xf32> to vector<1x16x128xf32>
    %c0_6 = arith.constant 0 : index
    %c0_7 = arith.constant 0 : index
    %c0_8 = arith.constant 0 : index
    %11 = vector.load %arg1[%c0_6, %c0_7, %c0_8] : memref<1x16x16xf32, #tpu.memory_space<vmem>>, vector<1x16x16xf32>
    "tpu.trace_start"() <{level = 10 : i32, message = "bnm,bmu->bnu"}> : () -> ()
    %cst_9 = arith.constant dense<0.000000e+00> : vector<1x16x128xf32>
    %12 = tpu.matmul %11, %8, %cst_9 {dimension_numbers = #tpu.dot_dimension_numbers<[2], [1], [1], [2], [0, 0, 0, 1, 1, 2], [0], [0]>} : vector<1x16x16xf32>, vector<1x16x128xf32>, vector<1x16x128xf32> -> vector<1x16x128xf32>
    "tpu.trace_stop"() : () -> ()
    %13 = arith.addf %12, %10 : vector<1x16x128xf32>
    %14 = math.tanh %13 : vector<1x16x128xf32>
    %c0_10 = arith.constant 0 : index
    %c0_11 = arith.constant 0 : index
    %c0_12 = arith.constant 0 : index
    %15 = vector.load %arg5[%c0_10, %c0_11, %c0_12] : memref<1x16x128xf32, #tpu.memory_space<vmem>>, vector<1x16x128xf32>
    tpu.vector_store %arg5[%c0_10, %c0_11, %c0_12], %14 {strides = array<i32>} : memref<1x16x128xf32, #tpu.memory_space<vmem>>, vector<1x16x128xf32>,
    return
  }
  func.func @transform_0(%arg0: i32) -> (i32, i32, i32) {
    %c0_i32 = arith.constant 0 : i32
    %c0_i32_0 = arith.constant 0 : i32
    %c0_i32_1 = arith.constant 0 : i32
    return %arg0, %c0_i32, %c0_i32_0 : i32, i32, i32
  }
  func.func @transform_1(%arg0: i32) -> (i32, i32, i32) {
    %c0_i32 = arith.constant 0 : i32
    %c0_i32_0 = arith.constant 0 : i32
    %c0_i32_1 = arith.constant 0 : i32
    return %arg0, %c0_i32, %c0_i32_0 : i32, i32, i32
  }
  func.func @transform_2(%arg0: i32) -> (i32, i32) {
    %c0_i32 = arith.constant 0 : i32
    %c0_i32_0 = arith.constant 0 : i32
    %c0_i32_1 = arith.constant 0 : i32
    return %c0_i32, %c0_i32_0 : i32, i32
  }
  func.func @transform_3(%arg0: i32) -> (i32, i32) {
    %c0_i32 = arith.constant 0 : i32
    %c0_i32_0 = arith.constant 0 : i32
    %c0_i32_1 = arith.constant 0 : i32
    return %c0_i32, %c0_i32_0 : i32, i32
  }
  func.func @transform_4(%arg0: i32) -> (i32, i32, i32) {
    %c0_i32 = arith.constant 0 : i32
    %c0_i32_0 = arith.constant 0 : i32
    %c0_i32_1 = arith.constant 0 : i32
    return %arg0, %c0_i32, %c0_i32_0 : i32, i32, i32
  }
}

</mosaic_0001>

<bundles_post_ra>
// kernel: tpu_custom_call.1
= control target key start
LH: loop header
LB: loop body
LE: loop exit
PB: predicated region body
PF: predicated region fallthrough
CT: control target
= control target key end

     0   :  { %s1132_s0 = inlined_call_operand.hbm [shape: f32[2,16,16], index: 0, kind: input, shape index: {}]   ;;  %s1133_s1 = inlined_call_operand.hbm [shape: f32[2,16,32], index: 1, kind: input, shape index: {}]   ;;  %s1134_s2 = inlined_call_operand.hbm [shape: f32[32,256], index: 2, kind: input, shape index: {}]   ;;  %s1135_s3 = inlined_call_operand.vmem [shape: f32[1,256], index: 3, kind: input, shape index: {}]   ;;  %s1136_s4 = inlined_call_operand.hbm [shape: f32[2,16,128], index: 4, kind: output, shape index: {}]  }
   0x1   :  { %1140 = sst [smem:[#allocation13_spill]] %s1132_s0 }
   0x2   :  { %9 = vsyncpa [#allocation3], 0 }
   0x3   :  { %11 = vsyncpa [#allocation3 + $0x1], 0 }
   0x4   :  { %12 = vsyncpa [#allocation6], 0 }
   0x5   :  { %14 = vsyncpa [#allocation6 + $0x1], 0 }
   0x6   :  { %15 = vsyncpa [#allocation4], 0 }
   0x7   :  { %17 = vsyncpa [#allocation4 + $0x1], 0  ;;  %s886_s15 = smov 0   ;;  %s888_s16 = smov 0  }
   0x8   :  { %s890_s17 = smov 0   ;;  %s892_s18 = smov 0  }
   0x9 LB: > { %s907_s19 = sadd.s32 4294967295, %s848_s18   ;;  %s583_s20 = sadd.s32 4294967294, %s848_s18   ;;  %s848_s18 = sphi %s892_s18, %s1158_s18   ;;  %s844_s17 = sphi %s890_s17, %s1157_s17   ;;  %s840_s16 = sphi %s888_s16, %s1156_s16   ;;  %s836_s15 = sphi %s886_s15, %s1155_s15  }
   0xa   : > { %p43_p0 = scmp.ne.s32.totalorder %s840_s16, %s836_s15  ;;  %p1137_p1 = scmp.eq.s32.totalorder %s907_s19, 0 }
   0xb   : > { %p141_p3 = scmp.eq.s32.totalorder %s583_s20, 1  ;;  %p584_p5 = scmp.ge.s32.totalorder %s848_s18, 1 }
   0xc   : > { %p916_p4 = por %p1137_p1, %p43_p0  ;;  %p148_p7 = scmp.lt.s32.totalorder %s848_s18, 3 }
   0xd   : > { %p921_p6 = por %p141_p3, %p43_p0  ;;  %s850_s24 = smov [#allocation7]  }
   0xe   : > { %s1141_s21 = scalar_select %p916_p4, 1, 0 }
   0xf   : > { %s1142_s22 = scalar_select %p921_p6, 1, 0 }
  0x10   : > { %p926_p8 = pnand %p584_p5, %p148_p7  ;;  %s160_s25 = sshll.u32 %s850_s24, 4  ;;  %s161_s25 = int_to_ptr.vmem [resolvable:$true] %s160_s25 }
  0x11   : > { %s940_s27 = sadd.s32 1, %s848_s18   ;;  %s30_s28 = sadd.s32 1, %s844_s17 }
  0x12   : > { %p631_p9 = pneg %p926_p8  ;;  %s27_s29 = ssub.s32 %s848_s18, %s940_s27 }
  0x13   : > { %s705_s30 = scalar_lea.vmem %s161_s25, 1024  ;;  %p713_p5 = scmp.lt.s32.totalorder %s161_s25, %s161_s25 }
  0x14   : > { %p935_p11 = pnand %p631_p9, %p1137_p1  ;;  %p706_p13 = scmp.ne.s32.totalorder %s161_s25, %s705_s30 }
  0x15   : > { %p714_p7 = scmp.lt.s32.totalorder %s705_s30, %s705_s30 }
  0x16   : > { %p696_p12 = pneg %p935_p11 }
  0x17   : > { %p715_p10 = por %p714_p7, %p713_p5 }
  0x18   : > { %p708_p0 = pnand %p706_p13, %p696_p12 }
  0x1a   : > { %p709_p3 = pneg %p708_p0 }
  0x1c   : > { %p716_p2 = pnand %p715_p10, %p709_p3 }
  0x1e   : > { %719 = shalt.err (!%p716_p2)
}
  0x1f   : > { %s851_s5 = smov 256   ;;  %s852_s6 = smov 16  }
  0x20   : > { %634 = dma.hbm_to_vmem [thread:$0]  (!%p935_p11), %s1134_s2, 1024, %s161_s25, [#allocation6], %s851_s5, %s851_s5, %s852_s6  }
  0x21   : > { %p28_p9 = scmp.eq.s32.totalorder %s27_s29, 0  ;;  %p37_p10 = scmp.ne.s32.totalorder %s844_s17, %s840_s16 }
  0x22   : > { %p38_p2 = scmp.eq.s32.totalorder %s848_s18, 0  ;;  %p647_p12 = scmp.lt.s32.totalorder %s848_s18, 2 }
  0x23   : > { %s957_s9 = scalar_select %p28_p9, %s844_s17, %s30_s28  }
  0x24   : > { %p39_p13 = por %p38_p2, %p37_p10  ;;  %p1145_p0 = scmp.eq.s32.totalorder %s907_s19, 1 }
  0x25   : > { %s177_s11 = sand.u32 1, %s844_s17   ;;  %s607_s12 = sshll.u32 %s848_s18, 8 }
  0x26   : > { %p961_p3 = por %p1145_p0, %p37_p10  ;;  %s967_s13 = sshll.u32 %s177_s11, 4 }
  0x27   : > { %s1147_s0 = sld [smem:[#allocation13_spill]]  ;;  %s181_s25 = scalar_lea.vmem [#allocation2], %s967_s13 }
  0x28   : > { %s1146_s10 = scalar_select %p961_p3, 1, 0 }
  0x29   : > { %s188_s26 = sshll.u32 %s181_s25, 4  ;;  %p977_p11 = pnand %p647_p12, %p39_p13  ;;  %s981_s26 = int_to_ptr.vmem [resolvable:$true] %s188_s26 }
  0x2a   : > { %s983_s29 = scalar_lea.sflag [#allocation3], %s177_s11 }
  0x2b   : > { %p722_p7 = pneg %p977_p11 }
  0x2d   : > { %s974_s24 = scalar_lea.hbm %s1147_s0, %s607_s12  ;;  %s725_s7 = scalar_lea.hbm %s1147_s0, 512 }
  0x2e   : > { %s720_s30 = scalar_lea.hbm %s974_s24, 256  ;;  %p726_p2 = scmp.lt.s32.totalorder %s974_s24, %s1147_s0 }
  0x2f   : > { %p721_p5 = scmp.ne.s32.totalorder %s974_s24, %s720_s30  ;;  %p727_p12 = scmp.lt.s32.totalorder %s725_s7, %s720_s30 }
  0x31   : > { %p723_p9 = pnand %p722_p7, %p721_p5  ;;  %p728_p13 = por %p727_p12, %p726_p2 }
  0x33   : > { %p724_p10 = pneg %p723_p9 }
  0x35   : > { %p729_p0 = pnand %p728_p13, %p724_p10 }
  0x37   : > { %732 = shalt.err (!%p729_p0)
}
  0x38   : > { %s733_s11 = scalar_lea.vmem %s981_s26, 256  ;;  %s853_s20 = smov [#allocation2]  }
  0x39   : > { %p734_p1 = scmp.ne.s32.totalorder %s981_s26, %s733_s11  ;;  %s738_s25 = sshll.u32 %s853_s20, 4  ;;  %s739_s25 = int_to_ptr.vmem [resolvable:$false] %s738_s25 }
  0x3a   : > { %s740_s5 = scalar_lea.vmem %s739_s25, 512  ;;  %p741_p6 = scmp.lt.s32.totalorder %s981_s26, %s739_s25 }
  0x3b   : > { %p736_p5 = pnand %p734_p1, %p722_p7  ;;  %p742_p3 = scmp.lt.s32.totalorder %s740_s5, %s733_s11 }
  0x3d   : > { %p737_p9 = pneg %p736_p5  ;;  %p743_p4 = por %p742_p3, %p741_p6 }
  0x3f   : > { %p744_p2 = pnand %p743_p4, %p737_p9 }
  0x41   : > { %747 = shalt.err (!%p744_p2)
}
  0x42   : > { %s854_s30 = smov 128   ;;  %s855_s6 = smov 8  }
  0x43   : > { %638 = dma.hbm_to_vmem [thread:$0]  (!%p977_p11), %s974_s24, 256, %s981_s26, %s983_s29, %s854_s30, %s854_s30, %s855_s6  }
  0x44   : > { %s1018_s14 = scalar_lea.hbm %s1133_s1, %s607_s12  ;;  %s202_s11 = scalar_lea.vmem [#allocation5], %s967_s13 }
  0x45   : > { %s209_s20 = sshll.u32 %s202_s11, 4  ;;  %s198_s25 = sand.u32 1, %s848_s18   ;;  %s1022_s20 = int_to_ptr.vmem [resolvable:$true] %s209_s20 }
  0x46   : > { %s199_s5 = scalar_lea.sflag [#allocation6], %s198_s25  ;;  %s748_s0 = scalar_lea.hbm %s1018_s14, 256 }
  0x47   : > { %p749_p1 = scmp.ne.s32.totalorder %s1018_s14, %s748_s0  ;;  %s753_s12 = scalar_lea.hbm %s1133_s1, 512 }
  0x48   : > { %p754_p3 = scmp.lt.s32.totalorder %s1018_s14, %s1133_s1  ;;  %p755_p10 = scmp.lt.s32.totalorder %s753_s12, %s748_s0 }
  0x49   : > { %p751_p4 = pnand %p749_p1, %p722_p7 }
  0x4a   : > { %p756_p12 = por %p755_p10, %p754_p3 }
  0x4b   : > { %p752_p6 = pneg %p751_p4 }
  0x4d   : > { %p757_p13 = pnand %p756_p12, %p752_p6 }
  0x4f   : > { %760 = shalt.err (!%p757_p13)
}
  0x50   : > { %s761_s13 = scalar_lea.vmem %s1022_s20, 256  ;;  %s856_s8 = smov [#allocation5]  }
  0x51   : > { %p762_p0 = scmp.ne.s32.totalorder %s1022_s20, %s761_s13  ;;  %s766_s11 = sshll.u32 %s856_s8, 4  ;;  %s767_s11 = int_to_ptr.vmem [resolvable:$false] %s766_s11 }
  0x52   : > { %s768_s25 = scalar_lea.vmem %s767_s11, 512  ;;  %p769_p2 = scmp.lt.s32.totalorder %s1022_s20, %s767_s11 }
  0x53   : > { %p764_p5 = pnand %p762_p0, %p722_p7  ;;  %p770_p1 = scmp.lt.s32.totalorder %s768_s25, %s761_s13 }
  0x55   : > { %p765_p9 = pneg %p764_p5  ;;  %p771_p4 = por %p770_p1, %p769_p2 }
  0x57   : > { %p772_p3 = pnand %p771_p4, %p765_p9 }
  0x59   : > { %775 = shalt.err (!%p772_p3)
}
  0x5a   : > { %641 = dma.hbm_to_vmem [thread:$0]  (!%p977_p11), %s1018_s14, 256, %s1022_s20, %s199_s5, %s854_s30, %s854_s30, %s855_s6  }
  0x5b   : > { %221 = sbr.rel (%p926_p8) target bundleno = 540 (0x21c), region = 36  ;;  %s1052_s0 = sand.u32 (!%p926_p8), 1, %s840_s16  }
  0x5c   : > { %s1055_s24 = sshll.u32 (!%p926_p8), %s1052_s0, 4  ;;  %s224_s26 = scalar_lea.sflag (!%p926_p8), [#allocation3], %s1052_s0 }
  0x5d   : > { %s227_s28 = scalar_lea.vmem (!%p926_p8), [#allocation2], %s1055_s24  ;;  %p1149_p7 = scmp.ne.s32.totalorder (!%p926_p8), %s1141_s21, 0 }
  0x60   : > { %819 = dma.done.wait (%p1149_p7), %s224_s26, 256  }
  0x61   : > { %821 = vsyncadd (%p1149_p7), %s224_s26, 4294967040  ;;  %s232_s23 = sand.u32 1, %s907_s19   ;;  %s236_s6 = scalar_lea.vmem [#allocation5], %s1055_s24 }
  0x62   : > { %s233_s30 = scalar_lea.sflag [#allocation6], %s232_s23 }
  0x63   : > { %823 = dma.done.wait (%p1149_p7), %s233_s30, 256  }
  0x64   : > { %825 = vsyncadd (%p1149_p7), %s233_s30, 4294967040  ;;  %p1150_p8 = scmp.eq.s32.totalorder %s907_s19, 0 }
  0x66   : > { %827 = dma.done.wait (%p1150_p8), [#allocation6], 1024   ;;  %p1151_p11 = pmov %p1150_p8 }
  0x67   : > { %v857_v0 = vmov 0.0   ;;  %v279_v1 = vld [vmem:[#allocation7 + $0x38] sm:$0xff]  ;;  %v278_v2 = vld [vmem:[#allocation7 + $0x30] sm:$0xff]  ;;  %v277_v3 = vld [vmem:[#allocation7 + $0x28] sm:$0xff]  ;;  %vm292_vm0 = vcmask 261120   ;;  %vm378_vm1 = vcmask 130048   ;;  %v282_v12 = vlaneseq }
  0x68   : > { %829 = vsyncadd (%p1151_p11), [#allocation6], 4294966272  ;;  %363 = vmatprep.mubr.f32.mxu0 %v857_v0  ;;  %323 = vmatprep.subr.mxu0 %v279_v1  ;;  %v276_v4 = vld [vmem:[#allocation7 + $0x20] sm:$0xff]  ;;  %v275_v5 = vld [vmem:[#allocation7 + $0x18] sm:$0xff]  ;;  %s609_s20 = sshll.u32 %s907_s19, 8  ;;  %s269_s5 = scalar_lea.vmem [#allocation8], %s1055_s24 }
  0x69   : > { %324 = vmatpush1.msra.mxu0 %v278_v2  ;;  %v274_v6 = vld [vmem:[#allocation7 + $0x10] sm:$0xff]  ;;  %v273_v7 = vld [vmem:[#allocation7 + $0x8] sm:$0xff]  ;;  %v272_v8 = vld [vmem:[#allocation7] sm:$0xff]  ;;  %v283_v13 = vshrl.u32 %v282_v12, 7  ;;  %s478_s12 = sshll.u32 %s269_s5, 4  ;;  %s1087_s13 = scalar_lea.hbm %s1136_s4, %s609_s20  ;;  %s1089_s12 = int_to_ptr.vmem [resolvable:$true] %s478_s12 }
  0x6a   : > { %325 = vmatprep.subr.mxu0 %v277_v3  ;;  %v270_v9 = vld [vmem:[%s236_s6] sm:$0xff]  ;;  %v271_v10 = vld [vmem:[%s236_s6 + $0x8] sm:$0xff]  ;;  %s465_s8 = scalar_lea.sflag [#allocation4], %s1052_s0  ;;  %s776_s11 = scalar_lea.vmem %s1089_s12, 256 }
  0x6b   : > { %326 = vmatpush1.msra.mxu0 %v276_v4  ;;  %v376_v11 = vld [vmem:[%s227_s28] sm:$0xff]  ;;  %v284_v14 = vsub.s32 0, %v283_v13  ;;  %v377_v22 = vld [vmem:[%s227_s28 + $0x8] sm:$0xff]  ;;  %v288_v23 = vsub.s32 1, %v283_v13  ;;  %p777_p6 = scmp.ne.s32.totalorder %s1089_s12, %s776_s11  ;;  %p1152_p10 = scmp.ne.s32.totalorder %s1146_s10, 0 }
  0x6c   : > { %327 = vmatprep.subr.mxu0 %v275_v5  ;;  %618 = vmatprep.mubr.msk.f32.mxu1 %vm378_vm1, %v376_v11  ;;  %v280_v15 = vld [vmem:[%s1135_s3] sm:$0x3]  ;;  %s858_s19 = smov [#allocation8]  }
  0x6d   : > { %328 = vmatpush1.msra.mxu0 %v274_v6  ;;  %v285_v18 = vrot.slane %v280_v15, %v284_v14  ;;  %v289_v25 = vrot.slane %v280_v15, %v288_v23  ;;  %p778_p12 = pnand %p777_p6, %p1152_p10  ;;  %s780_s25 = sshll.u32 %s858_s19, 4  ;;  %s781_s25 = int_to_ptr.vmem [resolvable:$false] %s780_s25 }
  0x6e   : > { %329 = vmatprep.subr.mxu0 %v273_v7  ;;  %s782_s24 = scalar_lea.vmem %s781_s25, 512  ;;  %p783_p0 = scmp.lt.s32.totalorder %s1089_s12, %s781_s25 }
  0x6f   : > { %330 = vmatpush1.msra.mxu0 %v272_v8  ;;  %p779_p13 = pneg %p778_p12  ;;  %p784_p5 = scmp.lt.s32.totalorder %s782_s24, %s776_s11 }
  0x70   : > { %598 = vmatmul.mubr.msk.f32.vlgmr.msra.gmra.mxu0 %vm292_vm0, %v270_v9 }
  0x71   : > { %369 = vmatprep.mubr.f32.mxu0 %v857_v0  ;;  %p785_p9 = por %p784_p5, %p783_p0 }
  0x73   : > { %p786_p2 = pnand %p785_p9, %p779_p13 }
  0x74   : > { %599 = vmatmul.mubr.msk.f32.gmra.mxu0 %vm292_vm0, %v271_v10 }
 0x130   : > { %v365_v16 = vpop.f32.mrf.mxu0 }
 0x131   : > { %v366_v21 = vadd.f32 %v365_v16, %v285_v18 }
 0x132   : > { %v367_v17 = vpop.f32.mrf.mxu0 }
 0x133   : > { %v368_v28 = vadd.f32 %v367_v17, %v289_v25 }
 0x134   : > { %v371_v19 = vpop.f32.mrf.mxu0 }
 0x135   : > { %v372_v20 = vadd.f32 %v371_v19, %v285_v18 }
 0x136   : > { %v373_v24 = vpop.f32.mrf.mxu0 }
 0x137   : > { %614 = vmatprep.subr.mxu1 %v372_v20  ;;  %v374_v26 = vadd.f32 %v373_v24, %v289_v25 }
 0x138   : > { %615 = vmatpush3.msra.mxu1 %v372_v20 }
 0x139   : > { %616 = vmatprep.subr.mxu1 %v366_v21 }
 0x13a   : > { %617 = vmatpush3.msra.mxu1 %v366_v21 }
 0x13b   : > { %619 = vmatmul.mubr.msk.f32.vlgmr.msra.gmra.mxu1 %vm378_vm1, %v377_v22 }
 0x1fb   : > { %v620_v27 = vpop.f32.mrf.mxu1 }
 0x1fc   : > { %v457_v29 = vadd.f32 %v620_v27, %v374_v26 }
 0x1fd   : > { %v451_v30 = vpop.f32.mrf.mxu1 }
 0x1fe   : > { %690 = vtanh.f32 %v457_v29  ;;  %v452_v31 = vadd.f32 %v451_v30, %v368_v28 }
 0x200   : > { %692 = vtanh.f32 %v452_v31 }
 0x20b   : > { %v691_v32 = vpop.eup %690 }
 0x20c   : > { %463 = vst [vmem:[%s269_s5 + $0x8] sm:$0xff] %v691_v32 }
 0x20d   : > { %v693_v33 = vpop.eup %692 }
 0x20e   : > { %462 = vst [vmem:[%s269_s5] sm:$0xff] %v693_v33 }
 0x20f   : > { %789 = shalt.err (!%p786_p2)
}
 0x210   : > { %s790_s26 = scalar_lea.hbm %s1087_s13, 256  ;;  %s794_s30 = scalar_lea.hbm %s1136_s4, 512 }
 0x211   : > { %p791_p1 = scmp.ne.s32.totalorder %s1087_s13, %s790_s26  ;;  %p795_p7 = scmp.lt.s32.totalorder %s1087_s13, %s1136_s4 }
 0x212   : > { %p796_p8 = scmp.lt.s32.totalorder %s794_s30, %s790_s26 }
 0x213   : > { %p792_p4 = pnand %p791_p1, %p1152_p10 }
 0x214   : > { %p797_p11 = por %p796_p8, %p795_p7 }
 0x215   : > { %p793_p3 = pneg %p792_p4 }
 0x217   : > { %p798_p6 = pnand %p797_p11, %p793_p3 }
 0x219   : > { %801 = shalt.err (!%p798_p6)
}
 0x21a   : > { %s859_s14 = smov 128   ;;  %s860_s20 = smov 8  }
 0x21b   : > { %629 = dma.vmem_to_hbm [thread:$0]  (%p1152_p10), %s1089_s12, 256, %s1087_s13, %s465_s8, %s859_s14, %s859_s14, %s860_s20  }
 0x21c PF: > { %s493_s5 = sand.u32 1, %s836_s15   ;;  %p1153_p12 = scmp.ne.s32.totalorder %s1142_s22, 0 }
 0x21d   : > { %p1154_p13 = scmp.ge.s32.totalorder %s848_s18, 2  ;;  %s494_s29 = scalar_lea.sflag [#allocation4], %s493_s5 }
 0x21f   : > { %p643_p0 = pnand %p1154_p13, %p1153_p12 }
 0x221   : > { %p644_p5 = pneg %p643_p0 }
 0x223   : > { %831 = dma.done.wait (%p644_p5), %s494_s29, 256  }
 0x224   : > { %833 = vsyncadd (%p644_p5), %s494_s29, 4294967040  ;;  %p20_p9 = scmp.ge.s32.totalorder %s940_s27, 4   ;;  %s1155_s15 = smov %s840_s16 }
 0x225   : > { %s1156_s16 = smov %s844_s17  ;;  %s1157_s17 = smov %s957_s9 }
 0x226   : > { %s1158_s18 = smov %s940_s27  ;;  %22 = sbr.rel (!%p20_p9) target bundleno = 9 (0x9), region = 98 }
 0x22b   :  { %499 = vsyncpa [#allocation3], 1 }
 0x22c   :  { %501 = vsyncpa [#allocation3 + $0x1], 1 }
 0x22d   :  { %502 = vsyncpa [#allocation6], 1 }
 0x22e   :  { %504 = vsyncpa [#allocation6 + $0x1], 1 }
 0x22f   :  { %505 = vsyncpa [#allocation4], 1 }
 0x230   :  { %507 = vsyncpa [#allocation4 + $0x1], 1 }

</bundles_post_ra>
